<compile_context>
chip_gen: v7x
topology: tpu7x:2x2x1
jax: 0.10.0
libtpu: 0.0.40
codegen_flags: <defaults>
</compile_context>

<pallas_src>
import jax
import jax.numpy as jnp
from jax.experimental import pallas as pl
from jax.experimental.pallas import tpu as pltpu

NEG_SLOPE = 0.01   # torch.nn.LeakyReLU default
LN_EPS = 1e-5      # torch.nn.LayerNorm default


def _leaky_relu(x):
    return jnp.where(x >= 0, x, NEG_SLOPE * x)


def _round_up(x, m):
    return ((x + m - 1) // m) * m


def edge_model_kernel(src_ref, dest_ref, edge_ref,
                      w0s_ref, w0d_ref, w0e_ref, b0_ref,
                      w1_ref, b1_ref, w2_ref, b2_ref,
                      gamma_ref, beta_ref, out_ref):
    # Hoist grid-invariant parameters (read once per grid step).
    b0 = b0_ref[...]
    b1 = b1_ref[...]
    b2 = b2_ref[...]
    gamma = gamma_ref[...]
    beta = beta_ref[...]
    w1 = w1_ref[...]
    w2 = w2_ref[...]

    # cat([src, dest, edge], 1) @ W0 + b0  ==  src@W0s + dest@W0d + edge@W0e + b0
    # (no lane-axis concatenation inside the kernel).
    h = (jnp.dot(src_ref[...], w0s_ref[...], preferred_element_type=jnp.float32)
         + jnp.dot(dest_ref[...], w0d_ref[...], preferred_element_type=jnp.float32)
         + jnp.dot(edge_ref[...], w0e_ref[...], preferred_element_type=jnp.float32)
         + b0)
    h = _leaky_relu(h)

    # hidden layer 1: Linear + LeakyReLU
    h = jnp.dot(h, w1, preferred_element_type=jnp.float32) + b1
    h = _leaky_relu(h)

    # output Linear + LeakyReLU (activate_last=True)
    y = jnp.dot(h, w2, preferred_element_type=jnp.float32) + b2
    y = _leaky_relu(y)

    # LayerNorm over last dim with one-pass statistics (one pair of XLU sums).
    n = y.shape[-1]
    s1 = jnp.sum(y, axis=-1, keepdims=True)
    s2 = jnp.sum(y * y, axis=-1, keepdims=True)
    mean = s1 * (1.0 / n)
    var = s2 * (1.0 / n) - mean * mean
    y = (y - mean) * jax.lax.rsqrt(var + LN_EPS)
    out_ref[...] = y * gamma + beta


def edge_model_forward(src, dest, edge_attr, u, batch, params, tile_e=1024):
    """Pallas-backed EdgeModel.forward.  `u` and `batch` are unused, exactly as
    in the PyTorch module's forward."""
    del u, batch
    E, f_node = src.shape
    f_edge = edge_attr.shape[1]
    hidden = params["w1"].shape[0]
    out_size = params["w2"].shape[1]

    # Pre-split W0 by input so the kernel never concatenates along the lane axis.
    w0 = params["w0"]
    w0_src = w0[:f_node]
    w0_dest = w0[f_node:2 * f_node]
    w0_edge = w0[2 * f_node:]

    # Tile the edge dimension; tile must be a multiple of 8 sublanes.
    tile_e = max(8, min(_round_up(tile_e, 8), _round_up(E, 8)))
    e_pad = _round_up(E, tile_e)
    if e_pad != E:
        pad = ((0, e_pad - E), (0, 0))
        src = jnp.pad(src, pad)
        dest = jnp.pad(dest, pad)
        edge_attr = jnp.pad(edge_attr, pad)

    grid = (e_pad // tile_e,)

    def row_spec(f):
        return pl.BlockSpec((tile_e, f), lambda i: (i, 0))

    def const_spec(shape):
        return pl.BlockSpec(shape, lambda i: (0, 0))

    in_specs = [
        row_spec(f_node),                 # src
        row_spec(f_node),                 # dest
        row_spec(f_edge),                 # edge_attr
        const_spec(w0_src.shape),         # W0 slice for src
        const_spec(w0_dest.shape),        # W0 slice for dest
        const_spec(w0_edge.shape),        # W0 slice for edge_attr
        const_spec((1, hidden)),          # b0
        const_spec((hidden, hidden)),     # w1
        const_spec((1, hidden)),          # b1
        const_spec((hidden, out_size)),   # w2
        const_spec((1, out_size)),        # b2
        const_spec((1, out_size)),        # gamma
        const_spec((1, out_size)),        # beta
    ]
    out_spec = pl.BlockSpec((tile_e, out_size), lambda i: (i, 0))

    out = pl.pallas_call(
        edge_model_kernel,
        out_shape=jax.ShapeDtypeStruct((e_pad, out_size), jnp.float32),
        grid=grid,
        in_specs=in_specs,
        out_specs=out_spec,
        compiler_params=pltpu.CompilerParams(
            dimension_semantics=("parallel",)),
    )(src, dest, edge_attr,
      w0_src, w0_dest, w0_edge, params["b0"],
      params["w1"], params["b1"], params["w2"], params["b2"],
      params["ln_gamma"], params["ln_beta"])

    return out[:E]


def init_params(key, in_size, out_size, n_hidden, hidden_size):
    """Deterministic synthetic weights (kernel is written for n_hidden=2)."""
    assert n_hidden == 2, "kernel is written for n_hidden=2"
    ks = jax.random.split(key, 6)

    def lin(k, fan_in, fan_out):
        kw, kb = jax.random.split(k)
        bound = 1.0 / jnp.sqrt(fan_in)
        w = jax.random.uniform(kw, (fan_in, fan_out), jnp.float32, -bound, bound)
        b = jax.random.uniform(kb, (1, fan_out), jnp.float32, -bound, bound)
        return w, b

    w0, b0 = lin(ks[0], in_size, hidden_size)
    w1, b1 = lin(ks[1], hidden_size, hidden_size)
    w2, b2 = lin(ks[2], hidden_size, out_size)
    return dict(
        w0=w0, b0=b0, w1=w1, b1=b1, w2=w2, b2=b2,
        ln_gamma=jnp.ones((1, out_size), jnp.float32),
        ln_beta=jnp.zeros((1, out_size), jnp.float32),
    )


def reference_forward(src, dest, edge_attr, params):
    x = jnp.concatenate([src, dest, edge_attr], axis=1)
    h = _leaky_relu(x @ params["w0"] + params["b0"])
    h = _leaky_relu(h @ params["w1"] + params["b1"])
    y = _leaky_relu(h @ params["w2"] + params["b2"])
    mean = jnp.mean(y, axis=-1, keepdims=True)
    var = jnp.mean((y - mean) ** 2, axis=-1, keepdims=True)
    y = (y - mean) * jax.lax.rsqrt(var + LN_EPS)
    return y * params["ln_gamma"] + params["ln_beta"]


if __name__ == "__main__":
    # Small shapes: 200 edges (not tile-aligned, exercises padding + grid),
    # node features = 8, edge features = 16.
    E, F_NODE, F_EDGE = 200, 8, 16
    IN_SIZE = 2 * F_NODE + F_EDGE       # 32 (cat of src, dest, edge_attr)
    HIDDEN, OUT_SIZE, N_HIDDEN = 32, 32, 2
    TILE_E = 64                         # small tile so the grid has several steps

    key = jax.random.PRNGKey(0)
    k_src, k_dst, k_edge, k_u, k_par = jax.random.split(key, 5)

    src = jax.random.normal(k_src, (E, F_NODE), jnp.float32)
    dest = jax.random.normal(k_dst, (E, F_NODE), jnp.float32)
    edge_attr = jax.random.normal(k_edge, (E, F_EDGE), jnp.float32)
    u = jax.random.normal(k_u, (1, 4), jnp.float32)          # unused by forward
    batch = jnp.zeros((E,), jnp.int32)                        # unused by forward

    params = init_params(k_par, IN_SIZE, OUT_SIZE, N_HIDDEN, HIDDEN)

    out = edge_model_forward(src, dest, edge_attr, u, batch, params, tile_e=TILE_E)
    out = jax.block_until_ready(out)

    ref = reference_forward(src, dest, edge_attr, params)
    assert out.shape == (E, OUT_SIZE)
    assert jnp.allclose(out, ref, atol=1e-4, rtol=1e-4), "mismatch vs JAX reference"

    print("KERNEL_OK")
</pallas_src>

<mosaic_0001>
module attributes {stable_mosaic.version = 11 : i64} {
  func.func @edge_model_kernel(%arg0: i32, %arg1: memref<64x8xf32, #tpu.memory_space<vmem>>, %arg2: memref<64x8xf32, #tpu.memory_space<vmem>>, %arg3: memref<64x16xf32, #tpu.memory_space<vmem>>, %arg4: memref<8x32xf32, #tpu.memory_space<vmem>>, %arg5: memref<8x32xf32, #tpu.memory_space<vmem>>, %arg6: memref<16x32xf32, #tpu.memory_space<vmem>>, %arg7: memref<1x32xf32, #tpu.memory_space<vmem>>, %arg8: memref<32x32xf32, #tpu.memory_space<vmem>>, %arg9: memref<1x32xf32, #tpu.memory_space<vmem>>, %arg10: memref<32x32xf32, #tpu.memory_space<vmem>>, %arg11: memref<1x32xf32, #tpu.memory_space<vmem>>, %arg12: memref<1x32xf32, #tpu.memory_space<vmem>>, %arg13: memref<1x32xf32, #tpu.memory_space<vmem>>, %arg14: memref<64x32xf32, #tpu.memory_space<vmem>>) attributes {dimension_semantics = [#tpu.dimension_semantics<parallel>], iteration_bounds = array<i64: 4>, scalar_prefetch = 0 : i64, scratch_operands = 0 : i64, tpu.core_type = #tpu.core_type<tc>, window_params = [{transform_indices = @transform_0, window_bounds = array<i64: 64, 8>}, {transform_indices = @transform_1, window_bounds = array<i64: 64, 8>}, {transform_indices = @transform_2, window_bounds = array<i64: 64, 16>}, {pipeline_mode = #tpu.pipeline_mode<synchronous>, transform_indices = @transform_3, window_bounds = array<i64: 8, 32>}, {pipeline_mode = #tpu.pipeline_mode<synchronous>, transform_indices = @transform_4, window_bounds = array<i64: 8, 32>}, {pipeline_mode = #tpu.pipeline_mode<synchronous>, transform_indices = @transform_5, window_bounds = array<i64: 16, 32>}, {pipeline_mode = #tpu.pipeline_mode<synchronous>, transform_indices = @transform_6, window_bounds = array<i64: 1, 32>}, {pipeline_mode = #tpu.pipeline_mode<synchronous>, transform_indices = @transform_7, window_bounds = array<i64: 32, 32>}, {pipeline_mode = #tpu.pipeline_mode<synchronous>, transform_indices = @transform_8, window_bounds = array<i64: 1, 32>}, {pipeline_mode = #tpu.pipeline_mode<synchronous>, transform_indices = @transform_9, window_bounds = array<i64: 32, 32>}, {pipeline_mode = #tpu.pipeline_mode<synchronous>, transform_indices = @transform_10, window_bounds = array<i64: 1, 32>}, {pipeline_mode = #tpu.pipeline_mode<synchronous>, transform_indices = @transform_11, window_bounds = array<i64: 1, 32>}, {pipeline_mode = #tpu.pipeline_mode<synchronous>, transform_indices = @transform_12, window_bounds = array<i64: 1, 32>}, {transform_indices = @transform_13, window_bounds = array<i64: 64, 32>}]} {
    %c0 = arith.constant 0 : index
    %c0_0 = arith.constant 0 : index
    %0 = vector.load %arg7[%c0, %c0_0] : memref<1x32xf32, #tpu.memory_space<vmem>>, vector<1x32xf32>
    %c0_1 = arith.constant 0 : index
    %c0_2 = arith.constant 0 : index
    %1 = vector.load %arg9[%c0_1, %c0_2] : memref<1x32xf32, #tpu.memory_space<vmem>>, vector<1x32xf32>
    %c0_3 = arith.constant 0 : index
    %c0_4 = arith.constant 0 : index
    %2 = vector.load %arg11[%c0_3, %c0_4] : memref<1x32xf32, #tpu.memory_space<vmem>>, vector<1x32xf32>
    %c0_5 = arith.constant 0 : index
    %c0_6 = arith.constant 0 : index
    %3 = vector.load %arg12[%c0_5, %c0_6] : memref<1x32xf32, #tpu.memory_space<vmem>>, vector<1x32xf32>
    %c0_7 = arith.constant 0 : index
    %c0_8 = arith.constant 0 : index
    %4 = vector.load %arg13[%c0_7, %c0_8] : memref<1x32xf32, #tpu.memory_space<vmem>>, vector<1x32xf32>
    %c0_9 = arith.constant 0 : index
    %c0_10 = arith.constant 0 : index
    %5 = vector.load %arg8[%c0_9, %c0_10] : memref<32x32xf32, #tpu.memory_space<vmem>>, vector<32x32xf32>
    %c0_11 = arith.constant 0 : index
    %c0_12 = arith.constant 0 : index
    %6 = vector.load %arg10[%c0_11, %c0_12] : memref<32x32xf32, #tpu.memory_space<vmem>>, vector<32x32xf32>
    %c0_13 = arith.constant 0 : index
    %c0_14 = arith.constant 0 : index
    %7 = vector.load %arg1[%c0_13, %c0_14] : memref<64x8xf32, #tpu.memory_space<vmem>>, vector<64x8xf32>
    %c0_15 = arith.constant 0 : index
    %c0_16 = arith.constant 0 : index
    %8 = vector.load %arg4[%c0_15, %c0_16] : memref<8x32xf32, #tpu.memory_space<vmem>>, vector<8x32xf32>
    %cst = arith.constant dense<0.000000e+00> : vector<64x32xf32>
    %9 = tpu.matmul %7, %8, %cst {dimension_numbers = #tpu.dot_dimension_numbers<[1], [0], [0], [1], [0, 0, 1, 1], [], []>} : vector<64x8xf32>, vector<8x32xf32>, vector<64x32xf32> -> vector<64x32xf32>
    %c0_17 = arith.constant 0 : index
    %c0_18 = arith.constant 0 : index
    %10 = vector.load %arg2[%c0_17, %c0_18] : memref<64x8xf32, #tpu.memory_space<vmem>>, vector<64x8xf32>
    %c0_19 = arith.constant 0 : index
    %c0_20 = arith.constant 0 : index
    %11 = vector.load %arg5[%c0_19, %c0_20] : memref<8x32xf32, #tpu.memory_space<vmem>>, vector<8x32xf32>
    %cst_21 = arith.constant dense<0.000000e+00> : vector<64x32xf32>
    %12 = tpu.matmul %10, %11, %cst_21 {dimension_numbers = #tpu.dot_dimension_numbers<[1], [0], [0], [1], [0, 0, 1, 1], [], []>} : vector<64x8xf32>, vector<8x32xf32>, vector<64x32xf32> -> vector<64x32xf32>
    %13 = arith.addf %9, %12 : vector<64x32xf32>
    %c0_22 = arith.constant 0 : index
    %c0_23 = arith.constant 0 : index
    %14 = vector.load %arg3[%c0_22, %c0_23] : memref<64x16xf32, #tpu.memory_space<vmem>>, vector<64x16xf32>
    %c0_24 = arith.constant 0 : index
    %c0_25 = arith.constant 0 : index
    %15 = vector.load %arg6[%c0_24, %c0_25] : memref<16x32xf32, #tpu.memory_space<vmem>>, vector<16x32xf32>
    %cst_26 = arith.constant dense<0.000000e+00> : vector<64x32xf32>
    %16 = tpu.matmul %14, %15, %cst_26 {dimension_numbers = #tpu.dot_dimension_numbers<[1], [0], [0], [1], [0, 0, 1, 1], [], []>} : vector<64x16xf32>, vector<16x32xf32>, vector<64x32xf32> -> vector<64x32xf32>
    %17 = arith.addf %13, %16 : vector<64x32xf32>
    %18 = vector.broadcast %0 : vector<1x32xf32> to vector<64x32xf32>
    %19 = arith.addf %17, %18 : vector<64x32xf32>
    %cst_27 = arith.constant 0.000000e+00 : f32
    %20 = vector.broadcast %cst_27 : f32 to vector<64x32xf32>
    %21 = arith.cmpf oge, %19, %20 : vector<64x32xf32>
    %cst_28 = arith.constant 0.00999999977 : f32
    %22 = vector.broadcast %cst_28 : f32 to vector<64x32xf32>
    %23 = arith.mulf %22, %19 : vector<64x32xf32>
    %24 = arith.select %21, %19, %23 : vector<64x32xi1>, vector<64x32xf32>
    %cst_29 = arith.constant dense<0.000000e+00> : vector<64x32xf32>
    %25 = tpu.matmul %24, %5, %cst_29 {dimension_numbers = #tpu.dot_dimension_numbers<[1], [0], [0], [1], [0, 0, 1, 1], [], []>} : vector<64x32xf32>, vector<32x32xf32>, vector<64x32xf32> -> vector<64x32xf32>
    %26 = vector.broadcast %1 : vector<1x32xf32> to vector<64x32xf32>
    %27 = arith.addf %25, %26 : vector<64x32xf32>
    %cst_30 = arith.constant 0.000000e+00 : f32
    %28 = vector.broadcast %cst_30 : f32 to vector<64x32xf32>
    %29 = arith.cmpf oge, %27, %28 : vector<64x32xf32>
    %cst_31 = arith.constant 0.00999999977 : f32
    %30 = vector.broadcast %cst_31 : f32 to vector<64x32xf32>
    %31 = arith.mulf %30, %27 : vector<64x32xf32>
    %32 = arith.select %29, %27, %31 : vector<64x32xi1>, vector<64x32xf32>
    %cst_32 = arith.constant dense<0.000000e+00> : vector<64x32xf32>
    %33 = tpu.matmul %32, %6, %cst_32 {dimension_numbers = #tpu.dot_dimension_numbers<[1], [0], [0], [1], [0, 0, 1, 1], [], []>} : vector<64x32xf32>, vector<32x32xf32>, vector<64x32xf32> -> vector<64x32xf32>
    %34 = vector.broadcast %2 : vector<1x32xf32> to vector<64x32xf32>
    %35 = arith.addf %33, %34 : vector<64x32xf32>
    %cst_33 = arith.constant 0.000000e+00 : f32
    %36 = vector.broadcast %cst_33 : f32 to vector<64x32xf32>
    %37 = arith.cmpf oge, %35, %36 : vector<64x32xf32>
    %cst_34 = arith.constant 0.00999999977 : f32
    %38 = vector.broadcast %cst_34 : f32 to vector<64x32xf32>
    %39 = arith.mulf %38, %35 : vector<64x32xf32>
    %40 = arith.select %37, %35, %39 : vector<64x32xi1>, vector<64x32xf32>
    %cst_35 = arith.constant dense<0.000000e+00> : vector<64xf32>
    %41 = vector.multi_reduction <add>, %40, %cst_35 [1] : vector<64x32xf32> to vector<64xf32>
    %42 = vector.shape_cast %41 : vector<64xf32> to vector<64x1xf32>
    %43 = arith.mulf %40, %40 : vector<64x32xf32>
    %cst_36 = arith.constant dense<0.000000e+00> : vector<64xf32>
    %44 = vector.multi_reduction <add>, %43, %cst_36 [1] : vector<64x32xf32> to vector<64xf32>
    %45 = vector.shape_cast %44 : vector<64xf32> to vector<64x1xf32>
    %cst_37 = arith.constant 3.125000e-02 : f32
    %46 = vector.broadcast %cst_37 : f32 to vector<64x1xf32>
    %47 = arith.mulf %42, %46 : vector<64x1xf32>
    %cst_38 = arith.constant 3.125000e-02 : f32
    %48 = vector.broadcast %cst_38 : f32 to vector<64x1xf32>
    %49 = arith.mulf %45, %48 : vector<64x1xf32>
    %50 = arith.mulf %47, %47 : vector<64x1xf32>
    %51 = arith.subf %49, %50 : vector<64x1xf32>
    %52 = vector.broadcast %47 : vector<64x1xf32> to vector<64x32xf32>
    %53 = arith.subf %40, %52 : vector<64x32xf32>
    %cst_39 = arith.constant 9.99999974E-6 : f32
    %54 = vector.broadcast %cst_39 : f32 to vector<64x1xf32>
    %55 = arith.addf %51, %54 : vector<64x1xf32>
    %56 = math.rsqrt %55 : vector<64x1xf32>
    %57 = vector.broadcast %56 : vector<64x1xf32> to vector<64x32xf32>
    %58 = arith.mulf %53, %57 : vector<64x32xf32>
    %59 = vector.broadcast %3 : vector<1x32xf32> to vector<64x32xf32>
    %60 = arith.mulf %58, %59 : vector<64x32xf32>
    %61 = vector.broadcast %4 : vector<1x32xf32> to vector<64x32xf32>
    %62 = arith.addf %60, %61 : vector<64x32xf32>
    %c0_40 = arith.constant 0 : index
    %c0_41 = arith.constant 0 : index
    %63 = vector.load %arg14[%c0_40, %c0_41] : memref<64x32xf32, #tpu.memory_space<vmem>>, vector<64x32xf32>
    tpu.vector_store %arg14[%c0_40, %c0_41], %62 {strides = array<i32>} : memref<64x32xf32, #tpu.memory_space<vmem>>, vector<64x32xf32>,
    return
  }
  func.func @transform_0(%arg0: i32) -> (i32, i32) {
    %c0_i32 = arith.constant 0 : i32
    %c0_i32_0 = arith.constant 0 : i32
    return %arg0, %c0_i32 : i32, i32
  }
  func.func @transform_1(%arg0: i32) -> (i32, i32) {
    %c0_i32 = arith.constant 0 : i32
    %c0_i32_0 = arith.constant 0 : i32
    return %arg0, %c0_i32 : i32, i32
  }
  func.func @transform_2(%arg0: i32) -> (i32, i32) {
    %c0_i32 = arith.constant 0 : i32
    %c0_i32_0 = arith.constant 0 : i32
    return %arg0, %c0_i32 : i32, i32
  }
  func.func @transform_3(%arg0: i32) -> (i32, i32) {
    %c0_i32 = arith.constant 0 : i32
    %c0_i32_0 = arith.constant 0 : i32
    %c0_i32_1 = arith.constant 0 : i32
    return %c0_i32, %c0_i32_0 : i32, i32
  }
  func.func @transform_4(%arg0: i32) -> (i32, i32) {
    %c0_i32 = arith.constant 0 : i32
    %c0_i32_0 = arith.constant 0 : i32
    %c0_i32_1 = arith.constant 0 : i32
    return %c0_i32, %c0_i32_0 : i32, i32
  }
  func.func @transform_5(%arg0: i32) -> (i32, i32) {
    %c0_i32 = arith.constant 0 : i32
    %c0_i32_0 = arith.constant 0 : i32
    %c0_i32_1 = arith.constant 0 : i32
    return %c0_i32, %c0_i32_0 : i32, i32
  }
  func.func @transform_6(%arg0: i32) -> (i32, i32) {
    %c0_i32 = arith.constant 0 : i32
    %c0_i32_0 = arith.constant 0 : i32
    %c0_i32_1 = arith.constant 0 : i32
    return %c0_i32, %c0_i32_0 : i32, i32
  }
  func.func @transform_7(%arg0: i32) -> (i32, i32) {
    %c0_i32 = arith.constant 0 : i32
    %c0_i32_0 = arith.constant 0 : i32
    %c0_i32_1 = arith.constant 0 : i32
    return %c0_i32, %c0_i32_0 : i32, i32
  }
  func.func @transform_8(%arg0: i32) -> (i32, i32) {
    %c0_i32 = arith.constant 0 : i32
    %c0_i32_0 = arith.constant 0 : i32
    %c0_i32_1 = arith.constant 0 : i32
    return %c0_i32, %c0_i32_0 : i32, i32
  }
  func.func @transform_9(%arg0: i32) -> (i32, i32) {
    %c0_i32 = arith.constant 0 : i32
    %c0_i32_0 = arith.constant 0 : i32
    %c0_i32_1 = arith.constant 0 : i32
    return %c0_i32, %c0_i32_0 : i32, i32
  }
  func.func @transform_10(%arg0: i32) -> (i32, i32) {
    %c0_i32 = arith.constant 0 : i32
    %c0_i32_0 = arith.constant 0 : i32
    %c0_i32_1 = arith.constant 0 : i32
    return %c0_i32, %c0_i32_0 : i32, i32
  }
  func.func @transform_11(%arg0: i32) -> (i32, i32) {
    %c0_i32 = arith.constant 0 : i32
    %c0_i32_0 = arith.constant 0 : i32
    %c0_i32_1 = arith.constant 0 : i32
    return %c0_i32, %c0_i32_0 : i32, i32
  }
  func.func @transform_12(%arg0: i32) -> (i32, i32) {
    %c0_i32 = arith.constant 0 : i32
    %c0_i32_0 = arith.constant 0 : i32
    %c0_i32_1 = arith.constant 0 : i32
    return %c0_i32, %c0_i32_0 : i32, i32
  }
  func.func @transform_13(%arg0: i32) -> (i32, i32) {
    %c0_i32 = arith.constant 0 : i32
    %c0_i32_0 = arith.constant 0 : i32
    return %arg0, %c0_i32 : i32, i32
  }
}

</mosaic_0001>

<bundles_post_ra>
// kernel: tpu_custom_call.1
= control target key start
LH: loop header
LB: loop body
LE: loop exit
PB: predicated region body
PF: predicated region fallthrough
CT: control target
= control target key end

     0   :  { %s1855_s25 = smov 0   ;;  %s2097_s0 = inlined_call_operand.vmem [shape: f32[256,8], index: 0, kind: input, shape index: {}]   ;;  %s2098_s1 = inlined_call_operand.vmem [shape: f32[256,8], index: 1, kind: input, shape index: {}]   ;;  %s2099_s2 = inlined_call_operand.vmem [shape: f32[256,16], index: 2, kind: input, shape index: {}]   ;;  %s2100_s3 = inlined_call_operand.vmem [shape: f32[8,32], index: 3, kind: input, shape index: {}]   ;;  %s2101_s4 = inlined_call_operand.vmem [shape: f32[8,32], index: 4, kind: input, shape index: {}]   ;;  %s2102_s5 = inlined_call_operand.vmem [shape: f32[16,32], index: 5, kind: input, shape index: {}]   ;;  %s2103_s6 = inlined_call_operand.vmem [shape: f32[1,32], index: 6, kind: input, shape index: {}]   ;;  %s2104_s7 = inlined_call_operand.vmem [shape: f32[32,32], index: 7, kind: input, shape index: {}]   ;;  %s2105_s8 = inlined_call_operand.vmem [shape: f32[1,32], index: 8, kind: input, shape index: {}]   ;;  %s2106_s9 = inlined_call_operand.vmem [shape: f32[32,32], index: 9, kind: input, shape index: {}]   ;;  %s2107_s10 = inlined_call_operand.vmem [shape: f32[1,32], index: 10, kind: input, shape index: {}]   ;;  %s2108_s11 = inlined_call_operand.vmem [shape: f32[1,32], index: 11, kind: input, shape index: {}]   ;;  %s2109_s12 = inlined_call_operand.vmem [shape: f32[1,32], index: 12, kind: input, shape index: {}]   ;;  %s2110_s13 = inlined_call_operand.vmem [shape: f32[256,32], index: 13, kind: output, shape index: {}]  }
   0x1 LB: > { %s1519_s26 = sadd.s32 4294967295, %s1783_s25   ;;  %p1523_p0 = scmp.ge.s32.totalorder %s1783_s25, 1  ;;  %s1783_s25 = sphi %s1855_s25, %s23_s25  }
   0x2   : > { %p410_p1 = scmp.lt.s32.totalorder %s1783_s25, 5 }
   0x4   : > { %p411_p2 = pnand %p1523_p0, %p410_p1 }
   0x5   : > { %v518_v0 = vld [vmem:[%s2101_s4] sm:$0xff] (!%p411_p2)  ;;  %s1524_s29 = sshll.u32 (!%p411_p2), %s1519_s26, 3  ;;  %v494_v3 = vld [vmem:[%s2104_s7 + $0x8] sm:$0xff] (!%p411_p2)  ;;  %vm519_vm0 = vcmask (!%p411_p2), 64512   ;;  %vm788_vm1 = vcmask (!%p411_p2), 130048   ;;  %v495_v32 = vld [vmem:[%s2104_s7 + $0x10] sm:$0xff] (!%p411_p2) }
   0x6   : > { %414 = sbr.rel (%p411_p2) target bundleno = 894 (0x37e), region = 72  ;;  %v509_v1 = vld [vmem:[%s2100_s3] sm:$0xff] (!%p411_p2)  ;;  %1631 = vmatprep.subr.mxu0 (!%p411_p2), %v518_v0  ;;  %p465_p3 = scmp.lt.s32.totalorder (!%p411_p2), %s1524_s29, 31  ;;  %1735 = vmatprep.subr.mxu1 (!%p411_p2), %v518_v0  ;;  %v787_v6 = vld [vmem:[%s2102_s5 + $0x8] sm:$0xff] (!%p411_p2)  ;;  %v496_v33 = vld [vmem:[%s2104_s7 + $0x18] sm:$0xff] (!%p411_p2)  ;;  %vm970_vm4 = vcmask (!%p411_p2), 261120  }
   0x7   : > { %v493_v2 = vld [vmem:[%s2104_s7] sm:$0xff] (!%p411_p2)  ;;  %1632 = vmatpush3.msra.mxu0 (!%p411_p2), %v518_v0  ;;  %1736 = vmatpush3.msra.mxu1 (!%p411_p2), %v518_v0  ;;  %v1723_v34 = vpack.c.bf16 (!%p411_p2), %v496_v33, %v495_v32  ;;  %v498_v36 = vld [vmem:[%s2106_s9 + $0x8] sm:$0xff] (!%p411_p2)  ;;  %v499_v48 = vld [vmem:[%s2106_s9 + $0x10] sm:$0xff] (!%p411_p2) }
   0x8   : > { %v1719_v4 = vpack.c.bf16 (!%p411_p2), %v494_v3, %v493_v2  ;;  %1645 = vmatprep.subr.mxu0 (!%p411_p2), %v509_v1  ;;  %v786_v5 = vld [vmem:[%s2102_s5] sm:$0xff] (!%p411_p2)  ;;  %v500_v49 = vld [vmem:[%s2106_s9 + $0x18] sm:$0xff] (!%p411_p2) }
   0x9   : > { %v1715_v10 = vpack.c.bf16 (!%p411_p2), %v787_v6, %v786_v5  ;;  %v497_v35 = vld [vmem:[%s2106_s9] sm:$0xff] (!%p411_p2)  ;;  %v1731_v56 = vpack.c.bf16 (!%p411_p2), %v500_v49, %v499_v48 }
   0xa   : > { %1720 = vmatprep.subr.bf16.mxu1 (!%p411_p2), %v1719_v4  ;;  %v1727_v37 = vpack.c.bf16 (!%p411_p2), %v498_v36, %v497_v35  ;;  %v1556_v42 = vld [vmem:[%s2103_s6] ss:$0 sm:$0xff] (!%p411_p2) }
   0xd   : > { %s2112_s29 = smov (!%p465_p3, %s1524_s29), 31 }
   0xe   : > { %s1881_s23 = sshll.u32 %s2112_s29, 3 }
   0xf   : > { %s474_s27 = scalar_lea.vmem %s2098_s1, %s1881_s23  ;;  %s1892_s14 = scalar_lea.vmem %s2097_s0, %s1881_s23 }
  0x10   : > { %v510_v7 = vld [vmem:[%s474_s27] sm:$0xff]  ;;  %v511_v8 = vld [vmem:[%s474_s27 + $0x8] sm:$0xff]  ;;  %v512_v9 = vld [vmem:[%s474_s27 + $0x10] sm:$0xff]  ;;  %s480_s16 = scalar_lea.vmem %s2099_s2, %s1881_s23  ;;  %s2052_s28 = scalar_lea.vmem %s2110_s13, %s1881_s23 }
  0x11   : > { %1633 = vmatprep.mubr.msk.f32.mxu0 %vm519_vm0, %v510_v7  ;;  %v513_v11 = vld [vmem:[%s474_s27 + $0x18] sm:$0xff]  ;;  %v501_v12 = vld [vmem:[%s1892_s14] sm:$0xff]  ;;  %v515_v14 = vld [vmem:[%s474_s27 + $0x28] sm:$0xff] }
  0x12   : > { %1634 = vmatmul.mubr.msk.f32.vlgmr.msra.gmra.mrb[0].mxu0 %vm519_vm0, %v511_v8  ;;  %v514_v13 = vld [vmem:[%s474_s27 + $0x20] sm:$0xff]  ;;  %v516_v15 = vld [vmem:[%s474_s27 + $0x30] sm:$0xff]  ;;  %v502_v16 = vld [vmem:[%s1892_s14 + $0x8] sm:$0xff] }
  0x13   : > { %1646 = vmatpush3.msra.mxu0 %v509_v1  ;;  %1636 = vmatprep.mubr.msk.f32.mxu0 %vm519_vm0, %v512_v9  ;;  %v503_v17 = vld [vmem:[%s1892_s14 + $0x10] sm:$0xff]  ;;  %v517_v18 = vld [vmem:[%s474_s27 + $0x38] sm:$0xff]  ;;  %v505_v20 = vld [vmem:[%s1892_s14 + $0x20] sm:$0xff] }
  0x14   : > { %1716 = vmatprep.subr.bf16.mxu0 %v1715_v10  ;;  %1639 = vmatprep.mubr.msk.f32.mxu1 %vm519_vm0, %v514_v13  ;;  %v504_v19 = vld [vmem:[%s1892_s14 + $0x18] sm:$0xff]  ;;  %v506_v21 = vld [vmem:[%s1892_s14 + $0x28] sm:$0xff]  ;;  %v507_v22 = vld [vmem:[%s1892_s14 + $0x30] sm:$0xff] }
  0x15   : > { %1640 = vmatmul.mubr.msk.f32.vlgmr.msra.gmra.mrb[0].mxu1 %vm519_vm0, %v515_v14  ;;  %v508_v23 = vld [vmem:[%s1892_s14 + $0x38] sm:$0xff]  ;;  %v778_v24 = vld [vmem:[%s480_s16] sm:$0xff]  ;;  %v779_v25 = vld [vmem:[%s480_s16 + $0x8] sm:$0xff] }
  0x16   : > { %1637 = vmatmul.mubr.msk.f32.gmra.mrb[2].mxu0 %vm519_vm0, %v513_v11  ;;  %1642 = vmatprep.mubr.msk.f32.mxu1 %vm519_vm0, %v516_v15  ;;  %v780_v26 = vld [vmem:[%s480_s16 + $0x10] sm:$0xff]  ;;  %v781_v27 = vld [vmem:[%s480_s16 + $0x18] sm:$0xff]  ;;  %v782_v28 = vld [vmem:[%s480_s16 + $0x20] sm:$0xff] }
  0x17   : > { %1647 = vmatprep.mubr.msk.f32.mxu0 %vm519_vm0, %v501_v12  ;;  %1722 = vmatpush3.bf16.msra.mxu1 %v1719_v4  ;;  %v783_v29 = vld [vmem:[%s480_s16 + $0x28] sm:$0xff]  ;;  %v784_v30 = vld [vmem:[%s480_s16 + $0x30] sm:$0xff]  ;;  %v785_v31 = vld [vmem:[%s480_s16 + $0x38] sm:$0xff] }
  0x18   : > { %1724 = vmatprep.subr.bf16.mxu1 %v1723_v34 }
  0x19   : > { %1643 = vmatmul.mubr.msk.f32.gmra.mrb[2].mxu1 %vm519_vm0, %v517_v18  ;;  %v1557_v18 = vld [vmem:[%s2105_s8] ss:$0 sm:$0xff] }
  0x1a   : > { %1648 = vmatmul.mubr.msk.f32.vlgmr.msra.gmra.mrb[0].mxu0 %vm519_vm0, %v502_v16 }
  0x1b   : > { %1718 = vmatpush3.bf16.msra.mxu0 %v1715_v10  ;;  %1650 = vmatprep.mubr.msk.f32.mxu0 %vm519_vm0, %v503_v17 }
  0x1c   : > { %1726 = vmatpush3.bf16.msra.mxu1 %v1723_v34 }
  0x1d   : > { %1728 = vmatprep.subr.bf16.mxu1 %v1727_v37 }
  0x1e   : > { %1651 = vmatmul.mubr.msk.f32.gmra.mrb[2].mxu0 %vm519_vm0, %v504_v19 }
  0x1f   : > { %1653 = vmatprep.mubr.msk.f32.mxu0 %vm519_vm0, %v505_v20 }
  0x22   : > { %1654 = vmatmul.mubr.msk.f32.gmra.mrb[4].mxu0 %vm519_vm0, %v506_v21 }
  0x23   : > { %1656 = vmatprep.mubr.msk.f32.mxu0 %vm519_vm0, %v507_v22 }
  0x26   : > { %1657 = vmatmul.mubr.msk.f32.gmra.mrb[6].mxu0 %vm519_vm0, %v508_v23 }
  0x27   : > { %1663 = vmatprep.mubr.msk.f32.mxu0 %vm788_vm1, %v778_v24 }
  0x2a   : > { %1664 = vmatmul.mubr.msk.f32.vlgmr.msra.gmra.mrb[0].mxu0 %vm788_vm1, %v779_v25 }
  0x2b   : > { %1666 = vmatprep.mubr.msk.f32.mxu0 %vm788_vm1, %v780_v26 }
  0x2e   : > { %1667 = vmatmul.mubr.msk.f32.gmra.mrb[2].mxu0 %vm788_vm1, %v781_v27 }
  0x2f   : > { %1669 = vmatprep.mubr.msk.f32.mxu0 %vm788_vm1, %v782_v28 }
  0x32   : > { %1670 = vmatmul.mubr.msk.f32.gmra.mrb[4].mxu0 %vm788_vm1, %v783_v29 }
  0x33   : > { %1672 = vmatprep.mubr.msk.f32.mxu0 %vm788_vm1, %v784_v30 }
  0x36   : > { %1673 = vmatmul.mubr.msk.f32.gmra.mrb[6].mxu0 %vm788_vm1, %v785_v31 }
  0xe8   : > { %v1641_v38 = vpop.f32.mrb[0].mxu1 }
  0xe9   : > { %v630_v39 = vpop.f32.mrb[1].mxu1 }
  0xec   : > { %v1644_v40 = vpop.f32.mrb[2].mxu1 }
  0xed   : > { %v640_v41 = vpop.f32.mrb[3].mxu1 }
  0xfd   : > { %v1665_v43 = vpop.f32.mrb[0].mxu0 }
  0xfe   : > { %v933_v44 = vadd.f32 %v1665_v43, %v1556_v42  ;;  %v879_v45 = vpop.f32.mrb[1].mxu0 }
  0xff   : > { %v932_v46 = vadd.f32 %v1556_v42, %v879_v45 }
 0x100   : > { %v949_v47 = vmul.f32 0.01, %v933_v44  ;;  %vm941_vm2 = vcmp.ge.f32.partialorder %v933_v44, 0.0 }
 0x101   : > { %vm940_vm3 = vcmp.ge.f32.partialorder %v932_v46, 0.0  ;;  %v948_v50 = vmul.f32 0.01, %v932_v46  ;;  %v1668_v51 = vpop.f32.mrb[2].mxu0 }
 0x102   : > { %v935_v52 = vadd.f32 %v1668_v51, %v1556_v42  ;;  %v889_v53 = vpop.f32.mrb[3].mxu0  ;;  %v957_v57 = vsel %vm941_vm2, %v933_v44, %v949_v47  ;;  %v1566_v51 = vld [vmem:[%s2107_s10] ss:$0 sm:$0xff] }
 0x103   : > { %v934_v54 = vadd.f32 %v1556_v42, %v889_v53  ;;  %v956_v55 = vsel %vm940_vm3, %v932_v46, %v948_v50 }
 0x104   : > { %v951_v58 = vmul.f32 0.01, %v935_v52  ;;  %1683 = vmatprep.mubr.msk.f32.mxu1 %vm970_vm4, %v956_v55  ;;  %vm943_vm5 = vcmp.ge.f32.partialorder %v935_v52, 0.0 }
 0x105   : > { %vm942_vm6 = vcmp.ge.f32.partialorder %v934_v54, 0.0  ;;  %v950_v59 = vmul.f32 0.01, %v934_v54  ;;  %v1671_v60 = vpop.f32.mrb[4].mxu0  ;;  %1684 = vmatmul.mubr.msk.f32.vlgmr.msra.gmra.mrb[4].mxu1 %vm970_vm4, %v957_v57 }
 0x106   : > { %v1737_v61 = vadd.f32 %v1671_v60, %v1641_v38  ;;  %v899_v62 = vpop.f32.mrb[5].mxu0  ;;  %1730 = vmatpush3.bf16.msra.mxu1 %v1727_v37  ;;  %v959_v2 = vsel %vm943_vm5, %v935_v52, %v951_v58 }
 0x107   : > { %v1738_v63 = vadd.f32 %v899_v62, %v630_v39  ;;  %v958_v0 = vsel %vm942_vm6, %v934_v54, %v950_v59  ;;  %1732 = vmatprep.subr.bf16.mxu1 %v1731_v56 }
 0x108   : > { %v937_v1 = vadd.f32 %v1737_v61, %v1556_v42  ;;  %1686 = vmatprep.mubr.msk.f32.mxu1 %vm970_vm4, %v958_v0 }
 0x109   : > { %v936_v3 = vadd.f32 %v1738_v63, %v1556_v42  ;;  %v1674_v4 = vpop.f32.mrb[6].mxu0  ;;  %1687 = vmatmul.mubr.msk.f32.gmra.mrb[6].mxu1 %vm970_vm4, %v959_v2 }
 0x10a   : > { %v953_v5 = vmul.f32 0.01, %v937_v1  ;;  %v1739_v6 = vadd.f32 %v1674_v4, %v1644_v40  ;;  %v909_v7 = vpop.f32.mrb[7].mxu0  ;;  %1734 = vmatpush3.bf16.msra.mxu1 %v1731_v56  ;;  %vm945_vm8 = vcmp.ge.f32.partialorder %v937_v1, 0.0 }
 0x10b   : > { %v952_v8 = vmul.f32 0.01, %v936_v3  ;;  %v1740_v9 = vadd.f32 %v909_v7, %v640_v41  ;;  %vm944_vm7 = vcmp.ge.f32.partialorder %v936_v3, 0.0 }
 0x10c   : > { %v939_v10 = vadd.f32 %v1739_v6, %v1556_v42  ;;  %v961_v14 = vsel %vm945_vm8, %v937_v1, %v953_v5 }
 0x10d   : > { %v938_v11 = vadd.f32 %v1740_v9, %v1556_v42  ;;  %v960_v12 = vsel %vm944_vm7, %v936_v3, %v952_v8 }
 0x10e   : > { %v955_v13 = vmul.f32 0.01, %v939_v10  ;;  %1689 = vmatprep.mubr.msk.f32.mxu1 %vm970_vm4, %v960_v12  ;;  %vm947_vm10 = vcmp.ge.f32.partialorder %v939_v10, 0.0 }
 0x10f   : > { %v954_v15 = vmul.f32 0.01, %v938_v11  ;;  %1690 = vmatmul.mubr.msk.f32.gmra.mrb[8].mxu1 %vm970_vm4, %v961_v14  ;;  %vm946_vm9 = vcmp.ge.f32.partialorder %v938_v11, 0.0 }
 0x110   : > { %v963_v17 = vsel %vm947_vm10, %v939_v10, %v955_v13 }
 0x111   : > { %v962_v16 = vsel %vm946_vm9, %v938_v11, %v954_v15 }
 0x112   : > { %1692 = vmatprep.mubr.msk.f32.mxu1 %vm970_vm4, %v962_v16 }
 0x113   : > { %1693 = vmatmul.mubr.msk.f32.gmra.mrb[10].mxu1 %vm970_vm4, %v963_v17 }
 0x1d8   : > { %v1685_v19 = vpop.f32.mrb[4].mxu1 }
 0x1d9   : > { %v1067_v20 = vadd.f32 %v1685_v19, %v1557_v18  ;;  %v1061_v21 = vpop.f32.mrb[5].mxu1 }
 0x1da   : > { %v1062_v22 = vadd.f32 %v1557_v18, %v1061_v21 }
 0x1db   : > { %v1109_v23 = vmul.f32 0.01, %v1067_v20  ;;  %vm1101_vm11 = vcmp.ge.f32.partialorder %v1067_v20, 0.0 }
 0x1dc   : > { %vm1100_vm12 = vcmp.ge.f32.partialorder %v1062_v22, 0.0  ;;  %v1108_v24 = vmul.f32 0.01, %v1062_v22  ;;  %v1688_v25 = vpop.f32.mrb[6].mxu1 }
 0x1dd   : > { %v1077_v26 = vadd.f32 %v1688_v25, %v1557_v18  ;;  %v1071_v27 = vpop.f32.mrb[7].mxu1  ;;  %v1117_v30 = vsel %vm1101_vm11, %v1067_v20, %v1109_v23 }
 0x1de   : > { %v1072_v28 = vadd.f32 %v1557_v18, %v1071_v27  ;;  %v1116_v29 = vsel %vm1100_vm12, %v1062_v22, %v1108_v24 }
 0x1df   : > { %v1111_v31 = vmul.f32 0.01, %v1077_v26  ;;  %1703 = vmatprep.mubr.msk.f32.mxu1 %vm970_vm4, %v1116_v29  ;;  %vm1103_vm13 = vcmp.ge.f32.partialorder %v1077_v26, 0.0 }
 0x1e0   : > { %vm1102_vm14 = vcmp.ge.f32.partialorder %v1072_v28, 0.0  ;;  %v1110_v32 = vmul.f32 0.01, %v1072_v28  ;;  %1704 = vmatmul.mubr.msk.f32.vlgmr.msra.gmra.mrb[12].mxu1 %vm970_vm4, %v1117_v30 }
 0x1e1   : > { %v1119_v37 = vsel %vm1103_vm13, %v1077_v26, %v1111_v31 }
 0x1e2   : > { %v1691_v33 = vpop.f32.mrb[8].mxu1  ;;  %v1118_v34 = vsel %vm1102_vm14, %v1072_v28, %v1110_v32 }
 0x1e3   : > { %v1087_v35 = vadd.f32 %v1691_v33, %v1557_v18  ;;  %v1081_v36 = vpop.f32.mrb[9].mxu1  ;;  %1706 = vmatprep.mubr.msk.f32.mxu1 %vm970_vm4, %v1118_v34 }
 0x1e4   : > { %v1082_v38 = vadd.f32 %v1557_v18, %v1081_v36  ;;  %1707 = vmatmul.mubr.msk.f32.gmra.mrb[14].mxu1 %vm970_vm4, %v1119_v37 }
 0x1e5   : > { %v1113_v39 = vmul.f32 0.01, %v1087_v35  ;;  %vm1105_vm15 = vcmp.ge.f32.partialorder %v1087_v35, 0.0 }
 0x1e6   : > { %vm1104_vm0 = vcmp.ge.f32.partialorder %v1082_v38, 0.0  ;;  %v1112_v40 = vmul.f32 0.01, %v1082_v38  ;;  %v1694_v41 = vpop.f32.mrb[10].mxu1 }
 0x1e7   : > { %v1097_v42 = vadd.f32 %v1694_v41, %v1557_v18  ;;  %v1091_v43 = vpop.f32.mrb[11].mxu1  ;;  %v1121_v47 = vsel %vm1105_vm15, %v1087_v35, %v1113_v39 }
 0x1e8   : > { %v1092_v44 = vadd.f32 %v1557_v18, %v1091_v43  ;;  %v1120_v45 = vsel %vm1104_vm0, %v1082_v38, %v1112_v40 }
 0x1e9   : > { %v1115_v46 = vmul.f32 0.01, %v1097_v42  ;;  %1709 = vmatprep.mubr.msk.f32.mxu1 %vm970_vm4, %v1120_v45  ;;  %vm1107_vm1 = vcmp.ge.f32.partialorder %v1097_v42, 0.0 }
 0x1ea   : > { %vm1106_vm2 = vcmp.ge.f32.partialorder %v1092_v44, 0.0  ;;  %v1114_v48 = vmul.f32 0.01, %v1092_v44  ;;  %1710 = vmatmul.mubr.msk.f32.gmra.mrb[16].mxu1 %vm970_vm4, %v1121_v47 }
 0x1eb   : > { %v1123_v50 = vsel %vm1107_vm1, %v1097_v42, %v1115_v46 }
 0x1ec   : > { %v1122_v49 = vsel %vm1106_vm2, %v1092_v44, %v1114_v48 }
 0x1ed   : > { %1712 = vmatprep.mubr.msk.f32.mxu1 %vm970_vm4, %v1122_v49 }
 0x1ee   : > { %1713 = vmatmul.mubr.msk.f32.gmra.mrb[18].mxu1 %vm970_vm4, %v1123_v50 }
 0x2b3   : > { %v1705_v52 = vpop.f32.mrb[12].mxu1 }
 0x2b4   : > { %v1226_v53 = vadd.f32 %v1705_v52, %v1566_v51  ;;  %v1220_v54 = vpop.f32.mrb[13].mxu1 }
 0x2b5   : > { %v1221_v55 = vadd.f32 %v1566_v51, %v1220_v54 }
 0x2b6   : > { %v1268_v56 = vmul.f32 0.01, %v1226_v53  ;;  %vm1260_vm3 = vcmp.ge.f32.partialorder %v1226_v53, 0.0 }
 0x2b7   : > { %v1267_v57 = vmul.f32 0.01, %v1221_v55  ;;  %v1708_v58 = vpop.f32.mrb[14].mxu1  ;;  %vm1259_vm5 = vcmp.ge.f32.partialorder %v1221_v55, 0.0 }
 0x2b8   : > { %v1236_v59 = vadd.f32 %v1708_v58, %v1566_v51  ;;  %v1230_v60 = vpop.f32.mrb[15].mxu1  ;;  %v1972_v61 = vsel %vm1260_vm3, %v1226_v53, %v1268_v56 }
 0x2b9   : > { %v1231_v62 = vadd.f32 %v1566_v51, %v1230_v60  ;;  %v1286_v63 = vsel %vm970_vm4, %v1972_v61, 0.0  ;;  %v1308_v0 = vmul.f32 %v1972_v61, %v1972_v61  ;;  %v1978_v2 = vsel %vm1259_vm5, %v1221_v55, %v1267_v57 }
 0x2ba   : > { %v1270_v1 = vmul.f32 0.01, %v1236_v59  ;;  %1287 = vadd.xlane.f32.xlu0 %v1286_v63  ;;  %vm1262_vm6 = vcmp.ge.f32.partialorder %v1236_v59, 0.0  ;;  %v1283_v7 = vsel %vm970_vm4, %v1978_v2, 0.0  ;;  %v1307_v8 = vmul.f32 %v1978_v2, %v1978_v2 }
 0x2bb   : > { %v1269_v3 = vmul.f32 0.01, %v1231_v62  ;;  %v1318_v4 = vsel %vm970_vm4, %v1308_v0, 0.0  ;;  %vm1261_vm7 = vcmp.ge.f32.partialorder %v1231_v62, 0.0 }
 0x2bc   : > { %1319 = vadd.xlane.f32.xlu1 %v1318_v4  ;;  %v1981_v5 = vsel %vm1262_vm6, %v1236_v59, %v1270_v1  ;;  %v1315_v15 = vsel %vm970_vm4, %v1307_v8, 0.0 }
 0x2bd   : > { %v1711_v6 = vpop.f32.mrb[16].mxu1  ;;  %v1987_v10 = vsel %vm1261_vm7, %v1231_v62, %v1269_v3  ;;  %v1292_v12 = vsel %vm970_vm4, %v1981_v5, 0.0  ;;  %v1310_v20 = vmul.f32 %v1981_v5, %v1981_v5 }
 0x2be   : > { %v1240_v9 = vpop.f32.mrb[17].mxu1  ;;  %1284 = vadd.xlane.f32.xlu0 %v1283_v7  ;;  %v1246_v13 = vadd.f32 %v1711_v6, %v1566_v51  ;;  %v1309_v16 = vmul.f32 %v1987_v10, %v1987_v10  ;;  %v1289_v19 = vsel %vm970_vm4, %v1987_v10, 0.0 }
 0x2bf   : > { %v1241_v11 = vadd.f32 %v1566_v51, %v1240_v9  ;;  %v1324_v25 = vsel %vm970_vm4, %v1310_v20, 0.0 }
 0x2c0   : > { %1293 = vadd.xlane.f32.xlu1 %v1292_v12  ;;  %v1272_v21 = vmul.f32 0.01, %v1246_v13  ;;  %v1321_v22 = vsel %vm970_vm4, %v1309_v16, 0.0  ;;  %vm1264_vm9 = vcmp.ge.f32.partialorder %v1246_v13, 0.0  ;;  %v2038_v16 = vld [vmem:[%s2108_s11] ss:$0 sm:$0xff] }
 0x2c1   : > { %v1714_v14 = vpop.f32.mrb[18].mxu1  ;;  %v1271_v17 = vmul.f32 0.01, %v1241_v11  ;;  %vm1263_vm8 = vcmp.ge.f32.partialorder %v1241_v11, 0.0 }
 0x2c2   : > { %1316 = vadd.xlane.f32.xlu0 %v1315_v15  ;;  %v1250_v18 = vpop.f32.mrb[19].mxu1  ;;  %v1256_v26 = vadd.f32 %v1714_v14, %v1566_v51  ;;  %v2002_v27 = vsel %vm1264_vm9, %v1246_v13, %v1272_v21  ;;  %v2043_v21 = vld [vmem:[%s2109_s12] ss:$0 sm:$0xff] }
 0x2c3   : > { %v1251_v23 = vadd.f32 %v1566_v51, %v1250_v18  ;;  %v1999_v24 = vsel %vm1263_vm8, %v1241_v11, %v1271_v17  ;;  %v1298_v31 = vsel %vm970_vm4, %v2002_v27, 0.0  ;;  %v1312_v32 = vmul.f32 %v2002_v27, %v2002_v27 }
 0x2c4   : > { %1290 = vadd.xlane.f32.xlu1 %v1289_v19  ;;  %v1295_v28 = vsel %vm970_vm4, %v1999_v24, 0.0  ;;  %v1311_v29 = vmul.f32 %v1999_v24, %v1999_v24  ;;  %v1274_v33 = vmul.f32 0.01, %v1256_v26  ;;  %vm1266_vm11 = vcmp.ge.f32.partialorder %v1256_v26, 0.0 }
 0x2c5   : > { %v1273_v30 = vmul.f32 0.01, %v1251_v23  ;;  %vm1265_vm10 = vcmp.ge.f32.partialorder %v1251_v23, 0.0  ;;  %v1330_v36 = vsel %vm970_vm4, %v1312_v32, 0.0 }
 0x2c6   : > { %1322 = vadd.xlane.f32.xlu0 %v1321_v22  ;;  %v1327_v34 = vsel %vm970_vm4, %v1311_v29, 0.0  ;;  %v2016_v37 = vsel %vm1266_vm11, %v1256_v26, %v1274_v33 }
 0x2c7   : > { %v2013_v35 = vsel %vm1265_vm10, %v1251_v23, %v1273_v30  ;;  %v1304_v40 = vsel %vm970_vm4, %v2016_v37, 0.0  ;;  %v1314_v41 = vmul.f32 %v2016_v37, %v2016_v37 }
 0x2c8   : > { %1325 = vadd.xlane.f32.xlu1 %v1324_v25  ;;  %v1301_v38 = vsel %vm970_vm4, %v2013_v35, 0.0  ;;  %v1313_v39 = vmul.f32 %v2013_v35, %v2013_v35 }
 0x2c9   : > { %v1336_v43 = vsel %vm970_vm4, %v1314_v41, 0.0 }
 0x2ca   : > { %1296 = vadd.xlane.f32.xlu0 %v1295_v28  ;;  %v1333_v42 = vsel %vm970_vm4, %v1313_v39, 0.0 }
 0x2cc   : > { %1299 = vadd.xlane.f32.xlu1 %v1298_v31 }
 0x2ce   : > { %1328 = vadd.xlane.f32.xlu0 %v1327_v34 }
 0x2d0   : > { %1331 = vadd.xlane.f32.xlu1 %v1330_v36 }
 0x2d2   : > { %1302 = vadd.xlane.f32.xlu0 %v1301_v38 }
 0x2d4   : > { %1305 = vadd.xlane.f32.xlu1 %v1304_v40 }
 0x2d6   : > { %1334 = vadd.xlane.f32.xlu0 %v1333_v42 }
 0x2d8   : > { %1337 = vadd.xlane.f32.xlu1 %v1336_v43 }
 0x347   : > { %v1288_v44 = vpop.xlane.xlu0 %1287 }
 0x348   : > { %v1340_v45 = vmul.f32 0.03125, %v1288_v44 }
 0x349   : > { %v1320_v46 = vpop.xlane.xlu1 %1319 }
 0x34a   : > { %v1356_v47 = vmul.f32 %v1340_v45, %v1340_v45  ;;  %v1348_v48 = vmul.f32 0.03125, %v1320_v46  ;;  %v1372_v13 = vsub.f32 %v1972_v61, %v1340_v45 }
 0x34b   : > { %v1285_v49 = vpop.xlane.xlu0 %1284 }
 0x34c   : > { %v1364_v50 = vsub.f32 %v1348_v48, %v1356_v47  ;;  %v1339_v51 = vmul.f32 0.03125, %v1285_v49 }
 0x34d   : > { %v1294_v52 = vpop.xlane.xlu1 %1293 }
 0x34e   : > { %v1380_v53 = vadd.f32 1e-05, %v1364_v50  ;;  %v1355_v55 = vmul.f32 %v1339_v51, %v1339_v51  ;;  %v2028_v58 = vmul.f32 0.03125, %v1294_v52  ;;  %v1371_v31 = vsub.f32 %v1978_v2, %v1339_v51 }
 0x34f   : > { %v1317_v54 = vpop.xlane.xlu0 %1316 }
 0x350   : > { %1761 = vrsqrt.f32 %v1380_v53  ;;  %v1347_v56 = vmul.f32 0.03125, %v1317_v54  ;;  %v1358_v4 = vmul.f32 %v2028_v58, %v2028_v58  ;;  %v1374_v48 = vsub.f32 %v1981_v5, %v2028_v58 }
 0x351   : > { %v1291_v57 = vpop.xlane.xlu1 %1290 }
 0x352   : > { %v1363_v59 = vsub.f32 %v1347_v56, %v1355_v55  ;;  %v1341_v60 = vmul.f32 0.03125, %v1291_v57 }
 0x353   : > { %v1323_v62 = vpop.xlane.xlu0 %1322 }
 0x354   : > { %v1379_v63 = vadd.f32 1e-05, %v1363_v59  ;;  %v1357_v0 = vmul.f32 %v1341_v60, %v1341_v60  ;;  %v1349_v1 = vmul.f32 0.03125, %v1323_v62  ;;  %v1373_v43 = vsub.f32 %v1987_v10, %v1341_v60 }
 0x355   : > { %v1326_v3 = vpop.xlane.xlu1 %1325 }
 0x356   : > { %1763 = vrsqrt.f32 %v1379_v63  ;;  %v1365_v6 = vsub.f32 %v1349_v1, %v1357_v0  ;;  %v1350_v7 = vmul.f32 0.03125, %v1326_v3 }
 0x357   : > { %v1297_v8 = vpop.xlane.xlu0 %1296 }
 0x358   : > { %v1381_v9 = vadd.f32 1e-05, %v1365_v6  ;;  %v1366_v11 = vsub.f32 %v1350_v7, %v1358_v4  ;;  %v2032_v12 = vmul.f32 0.03125, %v1297_v8 }
 0x359   : > { %v1300_v14 = vpop.xlane.xlu1 %1299 }
 0x35a   : > { %v1762_v15 = vpop.eup %1761  ;;  %1765 = vrsqrt.f32 %v1381_v9  ;;  %v1382_v17 = vadd.f32 1e-05, %v1366_v11  ;;  %v1344_v19 = vmul.f32 0.03125, %v1300_v14  ;;  %v1359_v61 = vmul.f32 %v2032_v12, %v2032_v12 }
 0x35b   : > { %v1396_v18 = vmul.f32 %v1762_v15, %v1372_v13  ;;  %v1329_v20 = vpop.xlane.xlu0 %1328  ;;  %v1375_v63 = vsub.f32 %v1999_v24, %v2032_v12 }
 0x35c   : > { %1767 = vrsqrt.f32 %v1382_v17  ;;  %v1351_v22 = vmul.f32 0.03125, %v1329_v20  ;;  %v1360_v26 = vmul.f32 %v1344_v19, %v1344_v19  ;;  %v1376_v1 = vsub.f32 %v2002_v27, %v1344_v19 }
 0x35d   : > { %v1410_v23 = vmul.f32 %v2038_v16, %v1396_v18  ;;  %v1332_v25 = vpop.xlane.xlu1 %1331 }
 0x35e   : > { %v1367_v28 = vsub.f32 %v1351_v22, %v1359_v61  ;;  %v1352_v29 = vmul.f32 0.03125, %v1332_v25 }
 0x35f   : > { %v1424_v30 = vadd.f32 %v2043_v21, %v1410_v23  ;;  %v1303_v32 = vpop.xlane.xlu0 %1302 }
 0x360   : > { %v1764_v33 = vpop.eup %1763  ;;  %v1383_v34 = vadd.f32 1e-05, %v1367_v28  ;;  %v1368_v36 = vsub.f32 %v1352_v29, %v1360_v26  ;;  %v1345_v38 = vmul.f32 0.03125, %v1303_v32 }
 0x361   : > { %1432 = vst.msk [vmem:[%s2052_s28 + $0x8] sm:$0xff] %vm970_vm4, %v1424_v30  ;;  %v1395_v39 = vmul.f32 %v1764_v33, %v1371_v31  ;;  %v1306_v40 = vpop.xlane.xlu1 %1305 }
 0x362   : > { %1769 = vrsqrt.f32 %v1383_v34  ;;  %v1384_v41 = vadd.f32 1e-05, %v1368_v36  ;;  %v1346_v44 = vmul.f32 0.03125, %v1306_v40  ;;  %v1361_v2 = vmul.f32 %v1345_v38, %v1345_v38 }
 0x363   : > { %v1409_v42 = vmul.f32 %v2038_v16, %v1395_v39  ;;  %v1335_v45 = vpop.xlane.xlu0 %1334  ;;  %v1377_v11 = vsub.f32 %v2013_v35, %v1345_v38 }
 0x364   : > { %v1766_v46 = vpop.eup %1765  ;;  %1771 = vrsqrt.f32 %v1384_v41  ;;  %v1353_v47 = vmul.f32 0.03125, %v1335_v45  ;;  %v1362_v53 = vmul.f32 %v1346_v44, %v1346_v44  ;;  %v1378_v27 = vsub.f32 %v2016_v37, %v1346_v44 }
 0x365   : > { %v1423_v49 = vadd.f32 %v2043_v21, %v1409_v42  ;;  %v1397_v50 = vmul.f32 %v1766_v46, %v1373_v43  ;;  %v1338_v51 = vpop.xlane.xlu1 %1337 }
 0x366   : > { %v1768_v52 = vpop.eup %1767  ;;  %v1369_v54 = vsub.f32 %v1353_v47, %v1361_v2  ;;  %v1354_v55 = vmul.f32 0.03125, %v1338_v51 }
 0x367   : > { %1431 = vst.msk [vmem:[%s2052_s28] sm:$0xff] %vm970_vm4, %v1423_v49  ;;  %v1411_v10 = vmul.f32 %v2038_v16, %v1397_v50  ;;  %v1398_v56 = vmul.f32 %v1768_v52, %v1374_v48 }
 0x368   : > { %v1385_v57 = vadd.f32 1e-05, %v1369_v54  ;;  %v1370_v59 = vsub.f32 %v1354_v55, %v1362_v53 }
 0x369   : > { %v1425_v60 = vadd.f32 %v2043_v21, %v1411_v10  ;;  %v1412_v5 = vmul.f32 %v2038_v16, %v1398_v56 }
 0x36a   : > { %1773 = vrsqrt.f32 %v1385_v57  ;;  %v1386_v58 = vadd.f32 1e-05, %v1370_v59 }
 0x36b   : > { %1433 = vst.msk [vmem:[%s2052_s28 + $0x10] sm:$0xff] %vm970_vm4, %v1425_v60  ;;  %v1426_v62 = vadd.f32 %v2043_v21, %v1412_v5 }
 0x36c   : > { %v1770_v0 = vpop.eup %1769  ;;  %1775 = vrsqrt.f32 %v1386_v58 }
 0x36d   : > { %1434 = vst.msk [vmem:[%s2052_s28 + $0x18] sm:$0xff] %vm970_vm4, %v1426_v62  ;;  %v1399_v3 = vmul.f32 %v1770_v0, %v1375_v63 }
 0x36e   : > { %v1772_v4 = vpop.eup %1771 }
 0x36f   : > { %v1413_v6 = vmul.f32 %v2038_v16, %v1399_v3  ;;  %v1400_v7 = vmul.f32 %v1772_v4, %v1376_v1 }
 0x371   : > { %v1427_v8 = vadd.f32 %v2043_v21, %v1413_v6  ;;  %v1414_v9 = vmul.f32 %v2038_v16, %v1400_v7 }
 0x373   : > { %1435 = vst.msk [vmem:[%s2052_s28 + $0x20] sm:$0xff] %vm970_vm4, %v1427_v8  ;;  %v1428_v24 = vadd.f32 %v2043_v21, %v1414_v9 }
 0x374   : > { %v1774_v12 = vpop.eup %1773 }
 0x375   : > { %1436 = vst.msk [vmem:[%s2052_s28 + $0x28] sm:$0xff] %vm970_vm4, %v1428_v24  ;;  %v1401_v13 = vmul.f32 %v1774_v12, %v1377_v11 }
 0x376   : > { %v1776_v14 = vpop.eup %1775 }
 0x377   : > { %v1415_v15 = vmul.f32 %v2038_v16, %v1401_v13  ;;  %v1402_v17 = vmul.f32 %v1776_v14, %v1378_v27 }
 0x379   : > { %v1429_v18 = vadd.f32 %v2043_v21, %v1415_v15  ;;  %v1416_v19 = vmul.f32 %v2038_v16, %v1402_v17 }
 0x37b   : > { %1437 = vst.msk [vmem:[%s2052_s28 + $0x30] sm:$0xff] %vm970_vm4, %v1429_v18  ;;  %v1430_v20 = vadd.f32 %v2043_v21, %v1416_v19 }
 0x37d   : > { %1438 = vst.msk [vmem:[%s2052_s28 + $0x38] sm:$0xff] %vm970_vm4, %v1430_v20 }
 0x37e PF: > { %s23_s25 = sadd.s32 1, %s1783_s25  }
 0x37f   : > { %p20_p4 = scmp.ge.s32.totalorder %s23_s25, 6  }
 0x381   :  { %22 = sbr.rel (!%p20_p4) target bundleno = 1 (0x1), region = 108 }

</bundles_post_ra>
